<compile_context>
chip_gen: v7x
topology: tpu7x:2x2x1
jax: 0.10.0
libtpu: 0.0.40
codegen_flags: <defaults>
</compile_context>

<pallas_src>
import functools

import jax
import jax.numpy as jnp
from jax.experimental import pallas as pl
from jax.experimental.pallas import tpu as pltpu


def _channel_attention_kernel(x_ref, w1_ref, b1_ref, w2_ref, b2_ref, o_ref,
                              *, s_valid):
    # x_ref / o_ref: (TB, C, S_pad)
    # w1_ref: (C, Cr)  b1_ref: (1, Cr)  w2_ref: (Cr, C)  b2_ref: (1, C)
    x = x_ref[...]
    s_pad = x.shape[-1]
    xf = x.astype(jnp.float32)

    # AdaptiveAvgPool2d(1): sum over the (zero-padded) lane axis, scaled by
    # the *true* spatial size.  Whole-block reduce — no per-batch loop.
    avg = jnp.sum(xf, axis=-1) * (1.0 / s_valid)                 # (TB, C)

    # AdaptiveMaxPool2d(1): mask the pad lanes so zero padding can't win.
    if s_pad != s_valid:                                         # static branch
        lane = jax.lax.broadcasted_iota(jnp.int32, xf.shape, 2)
        xf = jnp.where(lane < s_valid, xf, -jnp.inf)
    mx = jnp.max(xf, axis=-1)                                    # (TB, C)

    pooled = avg + mx                                            # (TB, C)

    # fc: Linear -> ReLU -> Linear -> Sigmoid, batched over the whole tile
    # (two small MXU matmuls per grid step, f32 accumulation).
    h = jnp.dot(pooled, w1_ref[...],
                preferred_element_type=jnp.float32) + b1_ref[...]
    h = jnp.maximum(h, 0.0)                                      # (TB, Cr)
    z = jnp.dot(h, w2_ref[...],
                preferred_element_type=jnp.float32) + b2_ref[...]
    gate = jax.nn.sigmoid(z)                                     # (TB, C)

    # Splat the per-(b, c) gate over the spatial lanes; lane-dense store.
    o_ref[...] = x * gate[:, :, None].astype(x.dtype)


def channel_attention(x, w1, b1, w2, b2):
    """x: (B, C, H, W).  w1: (C, Cr), b1: (Cr,), w2: (Cr, C), b2: (C,).

    Returns (B, C, H, W), matching the PyTorch ChannelAttention forward.
    """
    B, C, H, W = x.shape
    S = H * W
    Cr = w1.shape[1]
    itemsize = x.dtype.itemsize

    # Pad the flattened spatial axis to a multiple of 128 so stores stay
    # lane-dense (unmasked vst) for any H, W (e.g. 7x7, 14x14).
    s_pad = ((S + 127) // 128) * 128
    x_flat = x.reshape(B, C, S)
    if s_pad != S:
        x_flat = jnp.pad(x_flat, ((0, 0), (0, 0), (0, s_pad - S)))

    b1r = b1.reshape(1, Cr)
    b2r = b2.reshape(1, C)

    # ---- generation-aware VMEM budget & batch tiling -----------------------
    try:
        vmem_cap = int(pltpu.get_tpu_info().vmem_capacity_bytes)
    except Exception:
        vmem_cap = 64 << 20            # conservative fallback (v7x size)
    # Budget for the double-buffered in+out slabs, leaving headroom for the
    # resident weights and compiler scratch (~40 MiB usable on v7x,
    # ~88 MiB on v5e/v6e).
    slab_budget = (vmem_cap * 3) // 4 - (8 << 20)
    bytes_per_item = C * s_pad * itemsize
    max_tb = max(1, slab_budget // (4 * bytes_per_item))   # 2 bufs x (in+out)

    # Largest tile that fits VMEM, then split into several grid steps so both
    # v7x TensorCores (and the DMA pipeline) have work.  Keep per-step blocks
    # >= ~1 MiB when B allows, but never collapse to a single grid step.
    tb = min(B, max_tb)
    min_items = max(1, (1 << 20) // bytes_per_item)
    tb = min(tb, max(pl.cdiv(B, 4), min_items))
    if B > 1:
        tb = min(tb, pl.cdiv(B, 2))
    tb = max(tb, 1)
    grid = (pl.cdiv(B, tb),)           # ragged last block handled by Pallas

    cost = pl.CostEstimate(
        flops=B * (3 * C * s_pad + 4 * C * Cr),
        transcendentals=B * C,
        bytes_accessed=2 * B * C * s_pad * itemsize
        + (w1.size + w2.size + b1.size + b2.size) * 4,
    )

    kernel = functools.partial(_channel_attention_kernel, s_valid=S)

    out_flat = pl.pallas_call(
        kernel,
        out_shape=jax.ShapeDtypeStruct((B, C, s_pad), x.dtype),
        grid_spec=pltpu.PrefetchScalarGridSpec(
            num_scalar_prefetch=0,
            grid=grid,
            in_specs=[
                pl.BlockSpec((tb, C, s_pad), lambda i: (i, 0, 0)),
                pl.BlockSpec((C, Cr), lambda i: (0, 0)),
                pl.BlockSpec((1, Cr), lambda i: (0, 0)),
                pl.BlockSpec((Cr, C), lambda i: (0, 0)),
                pl.BlockSpec((1, C), lambda i: (0, 0)),
            ],
            out_specs=pl.BlockSpec((tb, C, s_pad), lambda i: (i, 0, 0)),
        ),
        compiler_params=pltpu.CompilerParams(
            dimension_semantics=("parallel",),
            vmem_limit_bytes=int((vmem_cap * 3) // 4),
        ),
        cost_estimate=cost,
    )(x_flat, w1, b1r, w2, b2r)

    if s_pad != S:
        out_flat = out_flat[:, :, :S]
    return out_flat.reshape(B, C, H, W)


def channel_attention_ref(x, w1, b1, w2, b2):
    """Pure-JAX reference mirroring the PyTorch forward."""
    y_avg = jnp.mean(x, axis=(2, 3))
    y_max = jnp.max(x, axis=(2, 3))
    y = y_avg + y_max
    h = jnp.maximum(y @ w1 + b1, 0.0)
    gate = jax.nn.sigmoid(h @ w2 + b2)
    return x * gate[:, :, None, None]


def _run_case(key, B, C, H, W, reduction):
    Cr = max(1, C // reduction)
    kx, kw1, kb1, kw2, kb2 = jax.random.split(key, 5)
    x = jax.random.normal(kx, (B, C, H, W), dtype=jnp.float32)
    # PyTorch Linear stores weight as (out, in); here kept pre-transposed to
    # (in, out) so the reference is y @ W, exactly as fc would compute.
    w1 = jax.random.normal(kw1, (C, Cr), dtype=jnp.float32) * 0.1
    b1 = jax.random.normal(kb1, (Cr,), dtype=jnp.float32) * 0.1
    w2 = jax.random.normal(kw2, (Cr, C), dtype=jnp.float32) * 0.1
    b2 = jax.random.normal(kb2, (C,), dtype=jnp.float32) * 0.1

    out = jax.block_until_ready(channel_attention(x, w1, b1, w2, b2))
    ref = channel_attention_ref(x, w1, b1, w2, b2)
    assert out.shape == (B, C, H, W)
    assert jnp.allclose(out, ref, atol=1e-5, rtol=1e-5)


if __name__ == "__main__":
    key = jax.random.PRNGKey(0)
    k1, k2 = jax.random.split(key, 2)

    # Module hyperparameters: channel=64, reduction=16 -> hidden=4.
    # Case 1: H=W=16 (S=256, already lane-dense).
    _run_case(k1, B=2, C=64, H=16, W=16, reduction=16)
    # Case 2: H=W=7 (S=49, exercises the lane-padding + masked-max path).
    _run_case(k2, B=2, C=64, H=7, W=7, reduction=16)

    print("KERNEL_OK")
</pallas_src>

<mosaic_0001>
module attributes {stable_mosaic.version = 11 : i64} {
  func.func @_channel_attention_kernel(%arg0: i32, %arg1: memref<1x64x256xf32, #tpu.memory_space<vmem>>, %arg2: memref<64x4xf32, #tpu.memory_space<vmem>>, %arg3: memref<1x4xf32, #tpu.memory_space<vmem>>, %arg4: memref<4x64xf32, #tpu.memory_space<vmem>>, %arg5: memref<1x64xf32, #tpu.memory_space<vmem>>, %arg6: memref<1x64x256xf32, #tpu.memory_space<vmem>>) attributes {dimension_semantics = [#tpu.dimension_semantics<parallel>], iteration_bounds = array<i64: 2>, scalar_prefetch = 0 : i64, scratch_operands = 0 : i64, tpu.core_type = #tpu.core_type<tc>, window_params = [{transform_indices = @transform_0, window_bounds = array<i64: 1, 64, 256>}, {pipeline_mode = #tpu.pipeline_mode<synchronous>, transform_indices = @transform_1, window_bounds = array<i64: 64, 4>}, {pipeline_mode = #tpu.pipeline_mode<synchronous>, transform_indices = @transform_2, window_bounds = array<i64: 1, 4>}, {pipeline_mode = #tpu.pipeline_mode<synchronous>, transform_indices = @transform_3, window_bounds = array<i64: 4, 64>}, {pipeline_mode = #tpu.pipeline_mode<synchronous>, transform_indices = @transform_4, window_bounds = array<i64: 1, 64>}, {transform_indices = @transform_5, window_bounds = array<i64: 1, 64, 256>}]} {
    %c0 = arith.constant 0 : index
    %c0_0 = arith.constant 0 : index
    %c0_1 = arith.constant 0 : index
    %0 = vector.load %arg1[%c0, %c0_0, %c0_1] : memref<1x64x256xf32, #tpu.memory_space<vmem>>, vector<1x64x256xf32>
    %cst = arith.constant dense<0.000000e+00> : vector<1x64xf32>
    %1 = vector.multi_reduction <add>, %0, %cst [2] : vector<1x64x256xf32> to vector<1x64xf32>
    %cst_2 = arith.constant 3.906250e-03 : f32
    %2 = vector.broadcast %cst_2 : f32 to vector<1x64xf32>
    %3 = arith.mulf %1, %2 : vector<1x64xf32>
    %cst_3 = arith.constant dense<0xFF800000> : vector<1x64xf32>
    %4 = vector.multi_reduction <maximumf>, %0, %cst_3 [2] : vector<1x64x256xf32> to vector<1x64xf32>
    %5 = arith.addf %3, %4 : vector<1x64xf32>
    %c0_4 = arith.constant 0 : index
    %c0_5 = arith.constant 0 : index
    %6 = vector.load %arg2[%c0_4, %c0_5] : memref<64x4xf32, #tpu.memory_space<vmem>>, vector<64x4xf32>
    %cst_6 = arith.constant dense<0.000000e+00> : vector<1x4xf32>
    %7 = tpu.matmul %5, %6, %cst_6 {dimension_numbers = #tpu.dot_dimension_numbers<[1], [0], [0], [1], [0, 0, 1, 1], [], []>} : vector<1x64xf32>, vector<64x4xf32>, vector<1x4xf32> -> vector<1x4xf32>
    %c0_7 = arith.constant 0 : index
    %c0_8 = arith.constant 0 : index
    %8 = vector.load %arg3[%c0_7, %c0_8] : memref<1x4xf32, #tpu.memory_space<vmem>>, vector<1x4xf32>
    %9 = arith.addf %7, %8 : vector<1x4xf32>
    %cst_9 = arith.constant 0.000000e+00 : f32
    %10 = vector.broadcast %cst_9 : f32 to vector<1x4xf32>
    %11 = arith.maximumf %9, %10 : vector<1x4xf32>
    %c0_10 = arith.constant 0 : index
    %c0_11 = arith.constant 0 : index
    %12 = vector.load %arg4[%c0_10, %c0_11] : memref<4x64xf32, #tpu.memory_space<vmem>>, vector<4x64xf32>
    %cst_12 = arith.constant dense<0.000000e+00> : vector<1x64xf32>
    %13 = tpu.matmul %11, %12, %cst_12 {dimension_numbers = #tpu.dot_dimension_numbers<[1], [0], [0], [1], [0, 0, 1, 1], [], []>} : vector<1x4xf32>, vector<4x64xf32>, vector<1x64xf32> -> vector<1x64xf32>
    %c0_13 = arith.constant 0 : index
    %c0_14 = arith.constant 0 : index
    %14 = vector.load %arg5[%c0_13, %c0_14] : memref<1x64xf32, #tpu.memory_space<vmem>>, vector<1x64xf32>
    %15 = arith.addf %13, %14 : vector<1x64xf32>
    %16 = arith.negf %15 : vector<1x64xf32>
    %17 = math.exp %16 : vector<1x64xf32>
    %cst_15 = arith.constant 1.000000e+00 : f32
    %18 = vector.broadcast %cst_15 : f32 to vector<1x64xf32>
    %19 = arith.addf %18, %17 : vector<1x64xf32>
    %20 = arith.divf %18, %19 : vector<1x64xf32>
    %21 = vector.shape_cast %20 : vector<1x64xf32> to vector<1x64x1xf32>
    %22 = vector.broadcast %21 : vector<1x64x1xf32> to vector<1x64x256xf32>
    %23 = arith.mulf %0, %22 : vector<1x64x256xf32>
    %c0_16 = arith.constant 0 : index
    %c0_17 = arith.constant 0 : index
    %c0_18 = arith.constant 0 : index
    %24 = vector.load %arg6[%c0_16, %c0_17, %c0_18] : memref<1x64x256xf32, #tpu.memory_space<vmem>>, vector<1x64x256xf32>
    tpu.vector_store %arg6[%c0_16, %c0_17, %c0_18], %23 {strides = array<i32>} : memref<1x64x256xf32, #tpu.memory_space<vmem>>, vector<1x64x256xf32>,
    return
  }
  func.func @transform_0(%arg0: i32) -> (i32, i32, i32) {
    %c0_i32 = arith.constant 0 : i32
    %c0_i32_0 = arith.constant 0 : i32
    %c0_i32_1 = arith.constant 0 : i32
    return %arg0, %c0_i32, %c0_i32_0 : i32, i32, i32
  }
  func.func @transform_1(%arg0: i32) -> (i32, i32) {
    %c0_i32 = arith.constant 0 : i32
    %c0_i32_0 = arith.constant 0 : i32
    %c0_i32_1 = arith.constant 0 : i32
    return %c0_i32, %c0_i32_0 : i32, i32
  }
  func.func @transform_2(%arg0: i32) -> (i32, i32) {
    %c0_i32 = arith.constant 0 : i32
    %c0_i32_0 = arith.constant 0 : i32
    %c0_i32_1 = arith.constant 0 : i32
    return %c0_i32, %c0_i32_0 : i32, i32
  }
  func.func @transform_3(%arg0: i32) -> (i32, i32) {
    %c0_i32 = arith.constant 0 : i32
    %c0_i32_0 = arith.constant 0 : i32
    %c0_i32_1 = arith.constant 0 : i32
    return %c0_i32, %c0_i32_0 : i32, i32
  }
  func.func @transform_4(%arg0: i32) -> (i32, i32) {
    %c0_i32 = arith.constant 0 : i32
    %c0_i32_0 = arith.constant 0 : i32
    %c0_i32_1 = arith.constant 0 : i32
    return %c0_i32, %c0_i32_0 : i32, i32
  }
  func.func @transform_5(%arg0: i32) -> (i32, i32, i32) {
    %c0_i32 = arith.constant 0 : i32
    %c0_i32_0 = arith.constant 0 : i32
    %c0_i32_1 = arith.constant 0 : i32
    return %arg0, %c0_i32, %c0_i32_0 : i32, i32, i32
  }
}

</mosaic_0001>

<bundles_post_ra>
// kernel: tpu_custom_call.1
= control target key start
LH: loop header
LB: loop body
LE: loop exit
PB: predicated region body
PF: predicated region fallthrough
CT: control target
= control target key end

     0   :  { %10 = vsyncpa [#allocation3], 0  ;;  %s1297_s0 = inlined_call_operand.hbm [shape: f32[2,64,256], index: 0, kind: input, shape index: {}]   ;;  %s1298_s1 = inlined_call_operand.vmem [shape: f32[64,4], index: 1, kind: input, shape index: {}]   ;;  %s1299_s2 = inlined_call_operand.vmem [shape: f32[1,4], index: 2, kind: input, shape index: {}]   ;;  %s1300_s3 = inlined_call_operand.vmem [shape: f32[4,64], index: 3, kind: input, shape index: {}]   ;;  %s1301_s4 = inlined_call_operand.vmem [shape: f32[1,64], index: 4, kind: input, shape index: {}]   ;;  %s1302_s5 = inlined_call_operand.hbm [shape: f32[2,64,256], index: 5, kind: output, shape index: {}]  }
   0x1   :  { %12 = vsyncpa [#allocation3 + $0x1], 0 }
   0x2   :  { %13 = vsyncpa [#allocation4], 0 }
   0x3   :  { %15 = vsyncpa [#allocation4 + $0x1], 0  ;;  %s970_s18 = smov 0   ;;  %s972_s19 = smov 0  }
   0x4   :  { %s974_s20 = smov 0   ;;  %s976_s21 = smov 0  }
   0x5 LB: > { %s991_s22 = sadd.s32 4294967295, %s929_s21   ;;  %s709_s23 = sadd.s32 4294967294, %s929_s21   ;;  %s929_s21 = sphi %s976_s21, %s1315_s21   ;;  %s925_s20 = sphi %s974_s20, %s1314_s20   ;;  %s921_s19 = sphi %s972_s19, %s1313_s19   ;;  %s917_s18 = sphi %s970_s18, %s1312_s18  }
   0x6   : > { %s995_s24 = sadd.s32 1, %s929_s21   ;;  %s28_s25 = sadd.s32 1, %s925_s20 }
   0x7   : > { %s25_s26 = ssub.s32 %s929_s21, %s995_s24  ;;  %p35_p0 = scmp.ne.s32.totalorder %s925_s20, %s921_s19 }
   0x8   : > { %p26_p1 = scmp.eq.s32.totalorder %s25_s26, 0  ;;  %p36_p2 = scmp.eq.s32.totalorder %s929_s21, 0 }
   0x9   : > { %p41_p3 = scmp.ne.s32.totalorder %s921_s19, %s917_s18  ;;  %p42_p4 = scmp.eq.s32.totalorder %s991_s22, 0 }
   0xa   : > { %s1007_s27 = scalar_select %p26_p1, %s925_s20, %s28_s25  }
   0xb   : > { %p1009_p5 = por %p36_p2, %p35_p0  ;;  %p1013_p6 = por %p42_p4, %p41_p3 }
   0xc   : > { %p149_p7 = scmp.eq.s32.totalorder %s991_s22, 1  ;;  %p155_p8 = scmp.eq.s32.totalorder %s709_s23, 1 }
   0xd   : > { %p788_p10 = scmp.lt.s32.totalorder %s929_s21, 2  ;;  %s187_s7 = sand.u32 1, %s925_s20  }
   0xe   : > { %p1020_p11 = por %p149_p7, %p35_p0  ;;  %p1024_p12 = por %p155_p8, %p41_p3 }
   0xf   : > { %s727_s8 = sshll.u32 %s929_s21, 11  ;;  %s712_s9 = sshll.u32 %s187_s7, 7 }
  0x10   : > { %s1306_s30 = scalar_select %p1020_p11, 1, 0 }
  0x11   : > { %s1307_s6 = scalar_select %p1024_p12, 1, 0 }
  0x12   : > { %s1033_s12 = scalar_lea.hbm %s1297_s0, %s727_s8  ;;  %s191_s13 = scalar_lea.vmem [#allocation2], %s712_s9 }
  0x13   : > { %s198_s14 = sshll.u32 %s191_s13, 4  ;;  %p1037_p13 = pnand %p788_p10, %p1009_p5  ;;  %s1041_s14 = int_to_ptr.vmem [resolvable:$true] %s198_s14 }
  0x14   : > { %s1043_s16 = scalar_lea.sflag [#allocation3], %s187_s7  ;;  %s833_s17 = scalar_lea.hbm %s1033_s12, 2048 }
  0x15   : > { %p834_p0 = scmp.ne.s32.totalorder %s1033_s12, %s833_s17  ;;  %p835_p1 = pneg %p1037_p13 }
  0x16   : > { %s838_s26 = scalar_lea.hbm %s1297_s0, 4096  ;;  %p839_p4 = scmp.lt.u32.totalorder %s1033_s12, %s1297_s0 }
  0x17   : > { %p836_p2 = pnand %p835_p1, %p834_p0  ;;  %p840_p5 = scmp.lt.u32.totalorder %s838_s26, %s833_s17 }
  0x18   : > { %p842_p8 = scmp.lt.u32.totalorder %s833_s17, %s1033_s12 }
  0x19   : > { %p837_p3 = pneg %p836_p2  ;;  %p841_p7 = por %p840_p5, %p839_p4 }
  0x1b   : > { %p843_p10 = por %p842_p8, %p841_p7 }
  0x1d   : > { %p844_p9 = pnand %p843_p10, %p837_p3 }
  0x1f   : > { %847 = shalt.err (!%p844_p9)
}
  0x20   : > { %s848_s7 = scalar_lea.vmem %s1041_s14, 2048  ;;  %s931_s9 = smov [#allocation2]  }
  0x21   : > { %p849_p0 = scmp.ne.s32.totalorder %s1041_s14, %s848_s7  ;;  %s853_s10 = sshll.u32 %s931_s9, 4  ;;  %s854_s10 = int_to_ptr.vmem [resolvable:$false] %s853_s10 }
  0x22   : > { %s855_s11 = scalar_lea.vmem %s854_s10, 4096  ;;  %p856_p11 = scmp.lt.s32.totalorder %s1041_s14, %s854_s10 }
  0x23   : > { %p851_p2 = pnand %p849_p0, %p835_p1  ;;  %p857_p4 = scmp.lt.s32.totalorder %s855_s11, %s848_s7 }
  0x25   : > { %p852_p12 = pneg %p851_p2  ;;  %p858_p5 = por %p857_p4, %p856_p11 }
  0x27   : > { %p859_p7 = pnand %p858_p5, %p852_p12 }
  0x29   : > { %862 = shalt.err (!%p859_p7)
}
  0x2a   : > { %s932_s13 = smov 256   ;;  %s933_s17 = smov 16  }
  0x2b   : > { %783 = dma.hbm_to_vmem [thread:$0]  (!%p1037_p13), %s1033_s12, 2048, %s1041_s14, %s1043_s16, %s932_s13, %s932_s13, %s933_s17  }
  0x2c   : > { %p715_p9 = scmp.ge.s32.totalorder %s929_s21, 1  ;;  %p206_p1 = scmp.lt.s32.totalorder %s929_s21, 3 }
  0x2e   : > { %p207_p3 = pnand %p715_p9, %p206_p1 }
  0x2f   : > { %s1074_s23 = sand.u32 (!%p207_p3), 1, %s921_s19  }
  0x30   : > { %210 = sbr.rel (%p207_p3) target bundleno = 842 (0x34a), region = 40  ;;  %s716_s25 = sshll.u32 (!%p207_p3), %s1074_s23, 7 }
  0x31   : > { %s213_s26 = scalar_lea.sflag (!%p207_p3), [#allocation3], %s1074_s23  ;;  %s1080_s28 = scalar_lea.vmem (!%p207_p3), [#allocation2], %s716_s25 }
  0x37   : > { %908 = dma.done.wait (%p1013_p6), %s213_s26, 2048  }
  0x38   : > { %910 = vsyncadd (%p1013_p6), %s213_s26, 4294965248  ;;  %v1087_v0 = vld [vmem:[%s1080_s28 + $0x20] sm:$0xff]  ;;  %v1090_v1 = vld [vmem:[%s1080_s28 + $0x28] sm:$0xff]  ;;  %v934_v35 = vmov 0.0|0.0   ;;  %vm935_vm0 = vmmov 0   ;;  %v936_v45 = vmov 0.0   ;;  %v340_v50 = vlaneseq }
  0x39   : > { %v1093_v2 = vld [vmem:[%s1080_s28] sm:$0xff]  ;;  %v265_v3 = vadd.f32 %v1090_v1, %v1087_v0  ;;  %v1098_v4 = vld [vmem:[%s1080_s28 + $0x8] sm:$0xff]  ;;  %v1101_v5 = vld [vmem:[%s1080_s28 + $0x30] sm:$0xff]  ;;  %v297_v16 = vmax.f32 %v1087_v0, %v1090_v1  ;;  %764 = vmatprep.subr.bf16.mxu0 %v934_v35  ;;  %756 = vmatprep.mubr.msk.f32.mxu0 %vm935_vm0, %v936_v45  ;;  %vm351_vm1 = vcmask 130112   ;;  %vm358_vm2 = vcmask 195712   ;;  %s1216_s10 = scalar_lea.vmem [#allocation5], %s716_s25 }
  0x3a   : > { %v1104_v6 = vld [vmem:[%s1080_s28 + $0x38] sm:$0xff]  ;;  %v259_v7 = vadd.f32 %v1098_v4, %v1093_v2  ;;  %v1109_v8 = vld [vmem:[%s1080_s28 + $0x10] sm:$0xff]  ;;  %v291_v13 = vmax.f32 %v1093_v2, %v1098_v4  ;;  %v1123_v14 = vld [vmem:[%s1080_s28 + $0x40] sm:$0xff]  ;;  %759 = vmatprep.subr.mxu1 %v936_v45  ;;  %761 = vmatprep.mubr.msk.f32.mxu1 %vm935_vm0, %v936_v45  ;;  %v341_v53 = vand.u32 127, %v340_v50  ;;  %v1190_v56 = vshrl.u32 %v340_v50, 7  ;;  %s728_s25 = sshll.u32 %s991_s22, 11 }
  0x3b   : > { %v1112_v9 = vld [vmem:[%s1080_s28 + $0x18] sm:$0xff]  ;;  %266 = vadd.xlane.f32.xlu1 %v265_v3  ;;  %v268_v10 = vadd.f32 %v1104_v6, %v1101_v5  ;;  %v1126_v15 = vld [vmem:[%s1080_s28 + $0x48] sm:$0xff]  ;;  %v1133_v18 = vld [vmem:[%s1080_s28 + $0x50] sm:$0xff]  ;;  %v300_v20 = vmax.f32 %v1101_v5, %v1104_v6  ;;  %vm365_vm3 = vcmask 261312   ;;  %vm372_vm4 = vcmask 326912   ;;  %s636_s11 = sshll.u32 %s1216_s10, 4  ;;  %s1247_s26 = scalar_lea.hbm %s1302_s5, %s728_s25  ;;  %s1249_s11 = int_to_ptr.vmem [resolvable:$true] %s636_s11 }
  0x3c   : > { %260 = vadd.xlane.f32.xlu0 %v259_v7  ;;  %v262_v11 = vadd.f32 %v1112_v9, %v1109_v8  ;;  %v294_v12 = vmax.f32 %v1109_v8, %v1112_v9  ;;  %v271_v17 = vadd.f32 %v1126_v15, %v1123_v14  ;;  %v1136_v19 = vld [vmem:[%s1080_s28 + $0x58] sm:$0xff]  ;;  %v1143_v22 = vld [vmem:[%s1080_s28 + $0x60] sm:$0xff]  ;;  %v1146_v23 = vld [vmem:[%s1080_s28 + $0x68] sm:$0xff]  ;;  %v303_v24 = vmax.f32 %v1123_v14, %v1126_v15  ;;  %s623_s22 = scalar_lea.sflag [#allocation4], %s1074_s23  ;;  %p1309_p11 = scmp.ne.s32.totalorder %s1306_s30, 0 }
  0x3d   : > { %v274_v21 = vadd.f32 %v1136_v19, %v1133_v18  ;;  %v277_v25 = vadd.f32 %v1146_v23, %v1143_v22  ;;  %v1153_v26 = vld [vmem:[%s1080_s28 + $0x70] sm:$0xff]  ;;  %v1156_v27 = vld [vmem:[%s1080_s28 + $0x78] sm:$0xff]  ;;  %v306_v28 = vmax.f32 %v1133_v18, %v1136_v19  ;;  %v309_v31 = vmax.f32 %v1143_v22, %v1146_v23  ;;  %v323_v32 = vld [vmem:[%s1298_s1] sm:$0xff]  ;;  %s863_s28 = scalar_lea.vmem %s1249_s11, 2048  ;;  %s937_s29 = smov [#allocation5]  }
  0x3e   : > { %v280_v29 = vadd.f32 %v1156_v27, %v1153_v26  ;;  %v312_v30 = vmax.f32 %v1153_v26, %v1156_v27  ;;  %v324_v33 = vld [vmem:[%s1298_s1 + $0x8] sm:$0xff]  ;;  %v325_v36 = vld [vmem:[%s1298_s1 + $0x10] sm:$0xff]  ;;  %v326_v37 = vld [vmem:[%s1298_s1 + $0x18] sm:$0xff]  ;;  %v346_v57 = vadd.s32 4294967288, %v341_v53  ;;  %v353_v60 = vadd.s32 4294967280, %v341_v53  ;;  %p864_p6 = scmp.ne.s32.totalorder %s1249_s11, %s863_s28  ;;  %s867_s12 = sshll.u32 %s937_s29, 4  ;;  %s868_s12 = int_to_ptr.vmem [resolvable:$false] %s867_s12 }
  0x3f   : > { %269 = vadd.xlane.f32.xlu1 %v268_v10  ;;  %v765_v34 = vpack.c.bf16 %v324_v33, %v323_v32  ;;  %v768_v38 = vpack.c.bf16 %v326_v37, %v325_v36  ;;  %v327_v39 = vld [vmem:[%s1298_s1 + $0x20] sm:$0xff]  ;;  %v328_v40 = vld [vmem:[%s1298_s1 + $0x28] sm:$0xff]  ;;  %v329_v42 = vld [vmem:[%s1298_s1 + $0x30] sm:$0xff]  ;;  %v360_v63 = vadd.s32 4294967272, %v341_v53  ;;  %v344_v10 = vsub.s32 %v341_v53, %v1190_v56  ;;  %s869_s14 = scalar_lea.vmem %s868_s12, 4096  ;;  %p870_p8 = scmp.lt.s32.totalorder %s1249_s11, %s868_s12 }
  0x40   : > { %263 = vadd.xlane.f32.xlu0 %v262_v11  ;;  %v771_v41 = vpack.c.bf16 %v328_v40, %v327_v39  ;;  %v330_v43 = vld [vmem:[%s1298_s1 + $0x38] sm:$0xff]  ;;  %v349_v7 = vsub.s32 %v346_v57, %v1190_v56  ;;  %v367_v11 = vadd.s32 4294967264, %v341_v53  ;;  %v388_v32 = vadd.s32 4294967240, %v341_v53  ;;  %p865_p12 = pnand %p864_p6, %p1309_p11  ;;  %p871_p10 = scmp.lt.s32.totalorder %s869_s14, %s863_s28 }
  0x41   : > { %766 = vmatpush3.bf16.msra.mxu0 %v765_v34  ;;  %v774_v44 = vpack.c.bf16 %v330_v43, %v329_v42  ;;  %v381_v36 = vadd.s32 4294967248, %v341_v53  ;;  %vm379_vm5 = vcmask 392512   ;;  %vm386_vm6 = vcmask 458112  }
  0x42   : > { %767 = vmatprep.subr.bf16.mxu0 %v934_v35  ;;  %v370_v33 = vsub.s32 %v367_v11, %v1190_v56  ;;  %v391_v45 = vsub.s32 %v388_v32, %v1190_v56  ;;  %vm393_vm7 = vcmask 523712   ;;  %vm395_vm8 = vcmask 523264   ;;  %p866_p13 = pneg %p865_p12  ;;  %p872_p0 = por %p871_p10, %p870_p8 }
  0x43   : > { %295 = vmax.xlane.f32.xlu1 %v294_v12  ;;  %vm475_vm9 = vcmask 1043456   ;;  %vm471_vm10 = vcmask 31744  }
  0x44   : > { %292 = vmax.xlane.f32.xlu0 %v291_v13  ;;  %p873_p2 = pnand %p872_p0, %p866_p13 }
  0x45   : > { %769 = vmatpush3.bf16.msra.mxu0 %v768_v38 }
  0x46   : > { %770 = vmatprep.subr.bf16.mxu0 %v934_v35 }
  0x47   : > { %298 = vmax.xlane.f32.xlu1 %v297_v16 }
  0x48   : > { %272 = vadd.xlane.f32.xlu0 %v271_v17 }
  0x49   : > { %772 = vmatpush3.bf16.msra.mxu0 %v771_v41 }
  0x4a   : > { %773 = vmatprep.subr.bf16.mxu0 %v934_v35 }
  0x4b   : > { %301 = vmax.xlane.f32.xlu1 %v300_v20 }
  0x4c   : > { %275 = vadd.xlane.f32.xlu0 %v274_v21  ;;  %v374_v21 = vadd.s32 4294967256, %v341_v53 }
  0x4d   : > { %775 = vmatpush3.bf16.msra.mxu0 %v774_v44 }
  0x4e   : > { %v377_v39 = vsub.s32 %v374_v21, %v1190_v56 }
  0x4f   : > { %304 = vmax.xlane.f32.xlu1 %v303_v24  ;;  %v356_v24 = vsub.s32 %v353_v60, %v1190_v56 }
  0x50   : > { %278 = vadd.xlane.f32.xlu0 %v277_v25 }
  0x53   : > { %307 = vmax.xlane.f32.xlu1 %v306_v28 }
  0x54   : > { %281 = vadd.xlane.f32.xlu0 %v280_v29  ;;  %v363_v29 = vsub.s32 %v360_v63, %v1190_v56 }
  0x57   : > { %313 = vmax.xlane.f32.xlu1 %v312_v30 }
  0x58   : > { %310 = vmax.xlane.f32.xlu0 %v309_v31 }
  0xc8   : > { %v267_v46 = vpop.xlane.xlu1 %266 }
  0xc9   : > { %v261_v47 = vpop.xlane.xlu0 %260  ;;  %v285_v3 = vmul.f32 0.00390625, %v267_v46 }
  0xca   : > { %v283_v61 = vmul.f32 0.00390625, %v261_v47 }
  0xcc   : > { %v270_v48 = vpop.xlane.xlu1 %269 }
  0xcd   : > { %v264_v49 = vpop.xlane.xlu0 %263  ;;  %v286_v13 = vmul.f32 0.00390625, %v270_v48 }
  0xce   : > { %v284_v62 = vmul.f32 0.00390625, %v264_v49  ;;  %v384_v49 = vsub.s32 %v381_v36, %v1190_v56 }
  0xd0   : > { %v296_v51 = vpop.xlane.xlu1 %295 }
  0xd1   : > { %v293_v52 = vpop.xlane.xlu0 %292  ;;  %v316_v16 = vadd.f32 %v296_v51, %v284_v62 }
  0xd2   : > { %v315_v17 = vadd.f32 %v293_v52, %v283_v61 }
  0xd3   : > { %v350_v37 = vrot.slane %v316_v16, %v349_v7  ;;  %v331_v7 = vld [vmem:[%s1299_s2] sm:$0x1] }
  0xd4   : > { %v299_v54 = vpop.xlane.xlu1 %298  ;;  %v345_v38 = vrot.slane %v315_v17, %v344_v10  ;;  %v470_v16 = vld [vmem:[%s1301_s4] sm:$0x1] }
  0xd5   : > { %v273_v55 = vpop.xlane.xlu0 %272  ;;  %v317_v25 = vadd.f32 %v299_v54, %v285_v3  ;;  %v469_v3 = vld [vmem:[%s1300_s3] sm:$0xf] }
  0xd6   : > { %v287_v28 = vmul.f32 0.00390625, %v273_v55  ;;  %v352_v50 = vsel %vm351_vm1, %v350_v37, %v345_v38  ;;  %760 = vmatpush3.msk.msra.mxu1 %vm475_vm9, %v469_v3 }
  0xd7   : > { %v357_v42 = vrot.slane %v317_v25, %v356_v24 }
  0xd8   : > { %v302_v58 = vpop.xlane.xlu1 %301 }
  0xd9   : > { %v276_v59 = vpop.xlane.xlu0 %275  ;;  %v318_v30 = vadd.f32 %v302_v58, %v286_v13  ;;  %v359_v54 = vsel %vm358_vm2, %v357_v42, %v352_v50 }
  0xda   : > { %v288_v31 = vmul.f32 0.00390625, %v276_v59 }
  0xdb   : > { %v364_v43 = vrot.slane %v318_v30, %v363_v29  ;;  %v557_v29 = vsub.s32 0, %v1190_v56 }
  0xdc   : > { %v305_v12 = vpop.xlane.xlu1 %304 }
  0xdd   : > { %v279_v20 = vpop.xlane.xlu0 %278  ;;  %v319_v34 = vadd.f32 %v305_v12, %v287_v28  ;;  %v366_v57 = vsel %vm365_vm3, %v364_v43, %v359_v54 }
  0xde   : > { %v289_v47 = vmul.f32 0.00390625, %v279_v20 }
  0xdf   : > { %v371_v46 = vrot.slane %v319_v34, %v370_v33 }
  0xe0   : > { %v308_v35 = vpop.xlane.xlu1 %307 }
  0xe1   : > { %v320_v40 = vadd.f32 %v308_v35, %v288_v31  ;;  %v282_v41 = vpop.xlane.xlu0 %281  ;;  %v373_v59 = vsel %vm372_vm4, %v371_v46, %v366_v57 }
  0xe2   : > { %v290_v44 = vmul.f32 0.00390625, %v282_v41 }
  0xe3   : > { %v378_v51 = vrot.slane %v320_v40, %v377_v39 }
  0xe4   : > { %v314_v48 = vpop.xlane.xlu1 %313 }
  0xe5   : > { %v322_v52 = vadd.f32 %v314_v48, %v290_v44  ;;  %v311_v53 = vpop.xlane.xlu0 %310  ;;  %v380_v61 = vsel %vm379_vm5, %v378_v51, %v373_v59 }
  0xe6   : > { %v321_v55 = vadd.f32 %v311_v53, %v289_v47 }
  0xe7   : > { %v392_v58 = vrot.slane %v322_v52, %v391_v45 }
  0xe8   : > { %v385_v60 = vrot.slane %v321_v55, %v384_v49 }
  0xea   : > { %v387_v62 = vsel %vm386_vm6, %v385_v60, %v380_v61 }
  0xeb   : > { %v394_v63 = vsel %vm393_vm7, %v392_v58, %v387_v62 }
  0xec   : > { %757 = vmatmul.mubr.msk.f32.vlgmr.msra.gmra.mrb[0].mxu0 %vm395_vm8, %v394_v63 }
 0x1bf   : > { %v464_v10 = vpop.f32.mrb[0].mxu0 }
 0x1c0   : > { %v465_v11 = vadd.f32 %v464_v10, %v331_v7  ;;  %v758_v12 = vpop.f32.mrb[1].mxu0 }
 0x1c2   : > { %v468_v13 = vmax.f32 %v465_v11, 0.0 }
 0x1c4   : > { %762 = vmatmul.mubr.msk.f32.vlgmr.msra.gmra.mrb[0].mxu1 %vm471_vm10, %v468_v13 }
 0x297   : > { %v545_v17 = vpop.f32.mrb[0].mxu1 }
 0x298   : > { %v546_v20 = vadd.f32 %v545_v17, %v470_v16  ;;  %v763_v21 = vpop.f32.mrb[1].mxu1 }
 0x29a   : > { %v721_v24 = vmul.f32 -1.442695, %v546_v20 }
 0x29c   : > { %829 = vpow2.f32 %v721_v24 }
 0x2a6   : > { %v830_v25 = vpop.eup %829 }
 0x2a7   : > { %v552_v28 = vadd.f32 1.0, %v830_v25 }
 0x2a9   : > { %831 = vrcp.f32 %v552_v28 }
 0x2b3   : > { %v832_v30 = vpop.eup %831 }
 0x2b4   : > { %v558_v31 = vrot.slane %v832_v30, %v557_v29 }
 0x2b6   : > { %564 = vbcast.lane.b32.xlu1 %v558_v31, 264  ;;  %560 = vbcast.lane.b32.xlu0 %v558_v31, 256 }
 0x2ba   : > { %568 = vbcast.lane.b32.xlu1 %v558_v31, 272  ;;  %576 = vbcast.lane.b32.xlu0 %v558_v31, 288 }
 0x2be   : > { %572 = vbcast.lane.b32.xlu1 %v558_v31, 280  ;;  %584 = vbcast.lane.b32.xlu0 %v558_v31, 304 }
 0x2c2   : > { %580 = vbcast.lane.b32.xlu1 %v558_v31, 296 }
 0x2c6   : > { %588 = vbcast.lane.b32.xlu1 %v558_v31, 312 }
 0x328   : > { %v565_v32 = vpop.permute.xlu1 %564  ;;  %v561_v33 = vpop.permute.xlu0 %560 }
 0x329   : > { %v592_v34 = vmul.f32 %v565_v32, %v1109_v8  ;;  %v593_v35 = vmul.f32 %v565_v32, %v1112_v9  ;;  %v590_v36 = vmul.f32 %v561_v33, %v1093_v2  ;;  %v591_v56 = vmul.f32 %v561_v33, %v1098_v4 }
 0x32b   : > { %608 = vst [vmem:[%s1216_s10 + $0x10] sm:$0xff] %v592_v34  ;;  %609 = vst [vmem:[%s1216_s10 + $0x18] sm:$0xff] %v593_v35 }
 0x32c   : > { %606 = vst [vmem:[%s1216_s10] sm:$0xff] %v590_v36  ;;  %607 = vst [vmem:[%s1216_s10 + $0x8] sm:$0xff] %v591_v56  ;;  %v569_v8 = vpop.permute.xlu1 %568  ;;  %v577_v2 = vpop.permute.xlu0 %576 }
 0x32d   : > { %v594_v4 = vmul.f32 %v569_v8, %v1087_v0  ;;  %v595_v9 = vmul.f32 %v569_v8, %v1090_v1  ;;  %v598_v37 = vmul.f32 %v577_v2, %v1123_v14  ;;  %v599_v38 = vmul.f32 %v577_v2, %v1126_v15 }
 0x32f   : > { %610 = vst [vmem:[%s1216_s10 + $0x20] sm:$0xff] %v594_v4  ;;  %611 = vst [vmem:[%s1216_s10 + $0x28] sm:$0xff] %v595_v9 }
 0x330   : > { %614 = vst [vmem:[%s1216_s10 + $0x40] sm:$0xff] %v598_v37  ;;  %615 = vst [vmem:[%s1216_s10 + $0x48] sm:$0xff] %v599_v38  ;;  %v573_v39 = vpop.permute.xlu1 %572  ;;  %v585_v40 = vpop.permute.xlu0 %584 }
 0x331   : > { %v596_v0 = vmul.f32 %v573_v39, %v1101_v5  ;;  %v597_v41 = vmul.f32 %v573_v39, %v1104_v6  ;;  %v602_v1 = vmul.f32 %v585_v40, %v1143_v22  ;;  %v603_v14 = vmul.f32 %v585_v40, %v1146_v23 }
 0x333   : > { %612 = vst [vmem:[%s1216_s10 + $0x30] sm:$0xff] %v596_v0  ;;  %613 = vst [vmem:[%s1216_s10 + $0x38] sm:$0xff] %v597_v41 }
 0x334   : > { %618 = vst [vmem:[%s1216_s10 + $0x60] sm:$0xff] %v602_v1  ;;  %619 = vst [vmem:[%s1216_s10 + $0x68] sm:$0xff] %v603_v14  ;;  %v581_v15 = vpop.permute.xlu1 %580 }
 0x335   : > { %v600_v42 = vmul.f32 %v581_v15, %v1133_v18  ;;  %v601_v43 = vmul.f32 %v581_v15, %v1136_v19 }
 0x337   : > { %616 = vst [vmem:[%s1216_s10 + $0x50] sm:$0xff] %v600_v42  ;;  %617 = vst [vmem:[%s1216_s10 + $0x58] sm:$0xff] %v601_v43 }
 0x338   : > { %v589_v5 = vpop.permute.xlu1 %588 }
 0x339   : > { %v604_v6 = vmul.f32 %v589_v5, %v1153_v26  ;;  %v605_v18 = vmul.f32 %v589_v5, %v1156_v27 }
 0x33b   : > { %620 = vst [vmem:[%s1216_s10 + $0x70] sm:$0xff] %v604_v6  ;;  %621 = vst [vmem:[%s1216_s10 + $0x78] sm:$0xff] %v605_v18 }
 0x33c   : > { %876 = shalt.err (!%p873_p2)
}
 0x33d   : > { %s877_s15 = scalar_lea.hbm %s1247_s26, 2048  ;;  %s881_s7 = scalar_lea.hbm %s1302_s5, 4096 }
 0x33e   : > { %p878_p4 = scmp.ne.s32.totalorder %s1247_s26, %s877_s15  ;;  %p882_p9 = scmp.lt.u32.totalorder %s1247_s26, %s1302_s5 }
 0x33f   : > { %p883_p1 = scmp.lt.u32.totalorder %s881_s7, %s877_s15  ;;  %p885_p6 = scmp.lt.u32.totalorder %s877_s15, %s1247_s26 }
 0x340   : > { %p879_p5 = pnand %p878_p4, %p1309_p11 }
 0x341   : > { %p884_p3 = por %p883_p1, %p882_p9 }
 0x342   : > { %p880_p7 = pneg %p879_p5 }
 0x343   : > { %p886_p12 = por %p885_p6, %p884_p3 }
 0x345   : > { %p887_p13 = pnand %p886_p12, %p880_p7 }
 0x347   : > { %890 = shalt.err (!%p887_p13)
}
 0x348   : > { %s938_s25 = smov 256   ;;  %s939_s13 = smov 16  }
 0x349   : > { %778 = dma.vmem_to_hbm [thread:$0]  (%p1309_p11), %s1249_s11, 2048, %s1247_s26, %s623_s22, %s938_s25, %s938_s25, %s939_s13  }
 0x34a PF: > { %s651_s17 = sand.u32 1, %s917_s18   ;;  %p1310_p8 = scmp.ne.s32.totalorder %s1307_s6, 0 }
 0x34b   : > { %p1311_p10 = scmp.ge.s32.totalorder %s929_s21, 2  ;;  %s652_s28 = scalar_lea.sflag [#allocation4], %s651_s17 }
 0x34d   : > { %p785_p0 = pnand %p1311_p10, %p1310_p8 }
 0x34f   : > { %912 = dma.done.wait (!%p785_p0), %s652_s28, 2048  }
 0x350   : > { %914 = vsyncadd (!%p785_p0), %s652_s28, 4294965248  ;;  %p18_p2 = scmp.ge.s32.totalorder %s995_s24, 4   ;;  %s1312_s18 = smov %s921_s19 }
 0x351   : > { %s1313_s19 = smov %s925_s20  ;;  %s1314_s20 = smov %s1007_s27 }
 0x352   : > { %s1315_s21 = smov %s995_s24  ;;  %20 = sbr.rel (!%p18_p2) target bundleno = 5 (0x5), region = 85 }
 0x359   :  { %657 = vsyncpa [#allocation3], 1 }
 0x35a   :  { %659 = vsyncpa [#allocation3 + $0x1], 1 }
 0x35b   :  { %660 = vsyncpa [#allocation4], 1 }
 0x35c   :  { %662 = vsyncpa [#allocation4 + $0x1], 1 }

</bundles_post_ra>
